<compile_context>
chip_gen: v7x
topology: tpu7x:2x2x1
jax: 0.10.0
libtpu: 0.0.40
codegen_flags: <defaults>
</compile_context>

<pallas_src>
import functools
import math

import jax
import jax.numpy as jnp
import numpy as np
from jax.experimental import pallas as pl
from jax.experimental.pallas import tpu as pltpu


def _arcsin_poly(x):
    """arcsin(x) for x in [0, 1] via Abramowitz & Stegun 4.4.46 (|err| <= 2e-8).

    lax.asin has no guaranteed Mosaic lowering; sqrt + polynomial is f32-exact
    for this use case and runs on VPU/EUP.
    """
    c0 = jnp.float32(1.5707963050)
    c1 = jnp.float32(-0.2145988016)
    c2 = jnp.float32(0.0889789874)
    c3 = jnp.float32(-0.0501743046)
    c4 = jnp.float32(0.0308918810)
    c5 = jnp.float32(-0.0170881256)
    c6 = jnp.float32(0.0066700901)
    c7 = jnp.float32(-0.0012624911)
    p = c7
    for ck in (c6, c5, c4, c3, c2, c1, c0):
        p = p * x + ck
    half_pi = jnp.float32(math.pi / 2.0)
    return half_pi - jnp.sqrt(jnp.maximum(jnp.float32(1.0) - x, 0.0)) * p


def prompt_kernel(x_ref, e_ref, o_ref, *, n_rows, n_cols, tile_n):
    # x_ref: (tile_n, D) f32 VMEM (tile of the input rows)
    # e_ref: (M, D)      f32 VMEM (prompt embeds, resident across the grid)
    # o_ref: (1, 1)      f32 VMEM (resident accumulator -> final mean)
    i = pl.program_id(0)

    @pl.when(i == 0)
    def _init():
        o_ref[...] = jnp.zeros_like(o_ref)

    x = x_ref[...]                                    # (tile_n, D)
    e = e_ref[...]                                    # (M, D)
    eps2 = jnp.float32(1e-24)                         # (F.normalize eps)^2

    # Normalize the small prompt-embed matrix in-kernel (M*D work, negligible).
    e_inv = jax.lax.rsqrt(
        jnp.maximum(jnp.sum(e * e, axis=-1, keepdims=True), eps2))
    en = e * e_inv                                    # unit rows

    # Cosine similarity on the MXU.  Compensated bf16 split (hi + lo terms)
    # keeps ~f32 accuracy while feeding the MXU native bf16 operands.
    xb = x.astype(jnp.bfloat16)
    x_lo = (x - xb.astype(jnp.float32)).astype(jnp.bfloat16)
    eb = en.astype(jnp.bfloat16)
    e_lo = (en - eb.astype(jnp.float32)).astype(jnp.bfloat16)

    def dot_t(a, b):                                  # a @ b.T, f32 accumulate
        return jax.lax.dot_general(
            a, b, (((1,), (1,)), ((), ())),
            preferred_element_type=jnp.float32)

    c = dot_t(xb, eb) + dot_t(xb, e_lo) + dot_t(x_lo, eb)   # (tile_n, M)

    # Normalize the input rows on the (tile_n, M) result via EUP rsqrt,
    # instead of rescaling the full (tile_n, D) operand.
    x_inv = jax.lax.rsqrt(
        jnp.maximum(jnp.sum(x * x, axis=-1, keepdims=True), eps2))  # (tile_n,1)
    cos = c * x_inv                                   # (tile_n, M)

    # ||a - b|| = sqrt(2 - 2 a.b) for unit vectors; clamp against rounding.
    dist = jnp.sqrt(jnp.maximum(jnp.float32(2.0) - jnp.float32(2.0) * cos,
                                jnp.float32(0.0)))
    half = jnp.minimum(dist * jnp.float32(0.5), jnp.float32(1.0))
    asn = _arcsin_poly(half)
    dists = jnp.float32(2.0) * asn * asn              # (tile_n, M)

    # Mask rows past the true N in a (possibly padded) last tile.
    row = i * tile_n + jax.lax.broadcasted_iota(jnp.int32, dists.shape, 0)
    dists = jnp.where(row < n_rows, dists, jnp.float32(0.0))

    o_ref[...] += jnp.sum(dists, keepdims=True)       # (1, 1) running sum

    @pl.when(i == pl.num_programs(0) - 1)
    def _finalize():
        o_ref[...] = o_ref[...] * jnp.float32(1.0 / (n_rows * n_cols))


def prompt_forward(inp, embed, weight, *, tile_n=256):
    """inp: (N, D) f32, embed: (M, D) f32, weight: python float -> f32 scalar."""
    inp = inp.astype(jnp.float32)
    embed = embed.astype(jnp.float32)
    n, d = inp.shape
    m, d2 = embed.shape
    assert d == d2, (d, d2)

    if n <= tile_n:
        tn = n                      # single block == full array (always legal)
    else:
        tn = tile_n                 # when tiling, rows must be a multiple of 8
        assert tn % 8 == 0

    grid = (pl.cdiv(n, tn),)
    kernel = functools.partial(prompt_kernel, n_rows=n, n_cols=m, tile_n=tn)

    out = pl.pallas_call(
        kernel,
        out_shape=jax.ShapeDtypeStruct((1, 1), jnp.float32),
        grid=grid,
        in_specs=[
            pl.BlockSpec((tn, d), lambda i: (i, 0)),      # input tiled over N
            pl.BlockSpec((m, d), lambda i: (0, 0)),       # embed resident
        ],
        out_specs=pl.BlockSpec((1, 1), lambda i: (0, 0)),  # resident accumulator
        compiler_params=pltpu.CompilerParams(
            dimension_semantics=("arbitrary",)),          # reduction over N tiles
    )(inp, embed)

    # |w| * mean(dists * sign(w)) == w * mean(dists): weight folds into a
    # single scalar multiply outside the kernel (replace_grad is identity in
    # forward; `stop` only affects gradients).
    return jnp.float32(weight) * out[0, 0]


def prompt_reference(inp, embed, weight):
    """Pure-JAX reference mirroring the PyTorch forward."""
    inp = inp.astype(jnp.float32)
    embed = embed.astype(jnp.float32)
    eps = 1e-12
    xn = inp / jnp.maximum(jnp.linalg.norm(inp, axis=-1, keepdims=True), eps)
    en = embed / jnp.maximum(jnp.linalg.norm(embed, axis=-1, keepdims=True), eps)
    diff = xn[:, None, :] - en[None, :, :]
    dists = jnp.linalg.norm(diff, axis=2) / 2.0
    dists = 2.0 * jnp.arcsin(jnp.minimum(dists, 1.0)) ** 2
    dists = dists * jnp.sign(jnp.float32(weight))
    return jnp.abs(jnp.float32(weight)) * jnp.mean(dists)


if __name__ == "__main__":
    key = jax.random.PRNGKey(0)
    k1, k2 = jax.random.split(key)

    N, M, D = 8, 4, 128            # batch of cutout embeds vs. M prompt embeds
    x = jax.random.normal(k1, (N, D), dtype=jnp.float32)
    embed = jax.random.normal(k2, (M, D), dtype=jnp.float32)
    weight = -0.5                  # exercises the sign()/abs() path
    # stop = -inf only matters for the backward pass (ReplaceGrad); forward ignores it.

    out = prompt_forward(x, embed, weight)
    out = jax.block_until_ready(out)

    ref = jax.block_until_ready(prompt_reference(x, embed, weight))
    np.testing.assert_allclose(np.asarray(out), np.asarray(ref),
                               rtol=1e-4, atol=1e-4)
    print("KERNEL_OK")
</pallas_src>

<mosaic_0001>
module attributes {stable_mosaic.version = 11 : i64} {
  func.func @prompt_kernel(%arg0: i32, %arg1: memref<8x128xf32, #tpu.memory_space<vmem>>, %arg2: memref<4x128xf32, #tpu.memory_space<vmem>>, %arg3: memref<1x1xf32, #tpu.memory_space<vmem>>) attributes {dimension_semantics = [#tpu.dimension_semantics<arbitrary>], iteration_bounds = array<i64: 1>, scalar_prefetch = 0 : i64, scratch_operands = 0 : i64, tpu.core_type = #tpu.core_type<tc>, window_params = [{transform_indices = @transform_0, window_bounds = array<i64: 8, 128>}, {pipeline_mode = #tpu.pipeline_mode<synchronous>, transform_indices = @transform_1, window_bounds = array<i64: 4, 128>}, {pipeline_mode = #tpu.pipeline_mode<synchronous>, transform_indices = @transform_2, window_bounds = array<i64: 1, 1>}]} {
    %c0_i32 = arith.constant 0 : i32
    %0 = arith.cmpi eq, %arg0, %c0_i32 : i32
    %1 = arith.extui %0 : i1 to i32
    %c0_i32_0 = arith.constant 0 : i32
    %2 = arith.cmpi ne, %1, %c0_i32_0 : i32
    scf.if %2 {
      %cst_36 = arith.constant 0.000000e+00 : f32
      %97 = vector.broadcast %cst_36 : f32 to vector<1x1xf32>
      %c0_37 = arith.constant 0 : index
      %c0_38 = arith.constant 0 : index
      %98 = vector.load %arg3[%c0_37, %c0_38] : memref<1x1xf32, #tpu.memory_space<vmem>>, vector<1x1xf32>
      tpu.vector_store %arg3[%c0_37, %c0_38], %97 {strides = array<i32>} : memref<1x1xf32, #tpu.memory_space<vmem>>, vector<1x1xf32>,
    } else {
    }
    %c0 = arith.constant 0 : index
    %c0_1 = arith.constant 0 : index
    %3 = vector.load %arg1[%c0, %c0_1] : memref<8x128xf32, #tpu.memory_space<vmem>>, vector<8x128xf32>
    %c0_2 = arith.constant 0 : index
    %c0_3 = arith.constant 0 : index
    %4 = vector.load %arg2[%c0_2, %c0_3] : memref<4x128xf32, #tpu.memory_space<vmem>>, vector<4x128xf32>
    %5 = arith.mulf %4, %4 : vector<4x128xf32>
    %cst = arith.constant dense<0.000000e+00> : vector<4xf32>
    %6 = vector.multi_reduction <add>, %5, %cst [1] : vector<4x128xf32> to vector<4xf32>
    %7 = vector.shape_cast %6 : vector<4xf32> to vector<4x1xf32>
    %cst_4 = arith.constant 1.000000e-24 : f32
    %8 = vector.broadcast %cst_4 : f32 to vector<4x1xf32>
    %9 = arith.maximumf %7, %8 : vector<4x1xf32>
    %10 = math.rsqrt %9 : vector<4x1xf32>
    %11 = vector.broadcast %10 : vector<4x1xf32> to vector<4x128xf32>
    %12 = arith.mulf %4, %11 : vector<4x128xf32>
    %13 = arith.truncf %3 : vector<8x128xf32> to vector<8x128xbf16>
    %14 = arith.extf %13 : vector<8x128xbf16> to vector<8x128xf32>
    %15 = arith.subf %3, %14 : vector<8x128xf32>
    %16 = arith.truncf %15 : vector<8x128xf32> to vector<8x128xbf16>
    %17 = arith.truncf %12 : vector<4x128xf32> to vector<4x128xbf16>
    %18 = arith.extf %17 : vector<4x128xbf16> to vector<4x128xf32>
    %19 = arith.subf %12, %18 : vector<4x128xf32>
    %20 = arith.truncf %19 : vector<4x128xf32> to vector<4x128xbf16>
    %cst_5 = arith.constant dense<0.000000e+00> : vector<8x4xf32>
    %21 = tpu.matmul %13, %17, %cst_5 {dimension_numbers = #tpu.dot_dimension_numbers<[1], [1], [0], [0], [0, 0, 1, 0], [], []>} : vector<8x128xbf16>, vector<4x128xbf16>, vector<8x4xf32> -> vector<8x4xf32>
    %cst_6 = arith.constant dense<0.000000e+00> : vector<8x4xf32>
    %22 = tpu.matmul %13, %20, %cst_6 {dimension_numbers = #tpu.dot_dimension_numbers<[1], [1], [0], [0], [0, 0, 1, 0], [], []>} : vector<8x128xbf16>, vector<4x128xbf16>, vector<8x4xf32> -> vector<8x4xf32>
    %23 = arith.addf %21, %22 : vector<8x4xf32>
    %cst_7 = arith.constant dense<0.000000e+00> : vector<8x4xf32>
    %24 = tpu.matmul %16, %17, %cst_7 {dimension_numbers = #tpu.dot_dimension_numbers<[1], [1], [0], [0], [0, 0, 1, 0], [], []>} : vector<8x128xbf16>, vector<4x128xbf16>, vector<8x4xf32> -> vector<8x4xf32>
    %25 = arith.addf %23, %24 : vector<8x4xf32>
    %26 = arith.mulf %3, %3 : vector<8x128xf32>
    %cst_8 = arith.constant dense<0.000000e+00> : vector<8xf32>
    %27 = vector.multi_reduction <add>, %26, %cst_8 [1] : vector<8x128xf32> to vector<8xf32>
    %28 = vector.shape_cast %27 : vector<8xf32> to vector<8x1xf32>
    %cst_9 = arith.constant 1.000000e-24 : f32
    %29 = vector.broadcast %cst_9 : f32 to vector<8x1xf32>
    %30 = arith.maximumf %28, %29 : vector<8x1xf32>
    %31 = math.rsqrt %30 : vector<8x1xf32>
    %32 = vector.broadcast %31 : vector<8x1xf32> to vector<8x4xf32>
    %33 = arith.mulf %25, %32 : vector<8x4xf32>
    %cst_10 = arith.constant 2.000000e+00 : f32
    %34 = vector.broadcast %cst_10 : f32 to vector<8x4xf32>
    %35 = arith.mulf %34, %33 : vector<8x4xf32>
    %cst_11 = arith.constant 2.000000e+00 : f32
    %36 = vector.broadcast %cst_11 : f32 to vector<8x4xf32>
    %37 = arith.subf %36, %35 : vector<8x4xf32>
    %cst_12 = arith.constant 0.000000e+00 : f32
    %38 = vector.broadcast %cst_12 : f32 to vector<8x4xf32>
    %39 = arith.maximumf %37, %38 : vector<8x4xf32>
    %40 = math.sqrt %39 : vector<8x4xf32>
    %cst_13 = arith.constant 5.000000e-01 : f32
    %41 = vector.broadcast %cst_13 : f32 to vector<8x4xf32>
    %42 = arith.mulf %40, %41 : vector<8x4xf32>
    %cst_14 = arith.constant 1.000000e+00 : f32
    %43 = vector.broadcast %cst_14 : f32 to vector<8x4xf32>
    %44 = arith.minimumf %42, %43 : vector<8x4xf32>
    %cst_15 = arith.constant -0.0012624911 : f32
    %45 = vector.broadcast %cst_15 : f32 to vector<8x4xf32>
    %46 = arith.mulf %45, %44 : vector<8x4xf32>
    %cst_16 = arith.constant 6.670090e-03 : f32
    %47 = vector.broadcast %cst_16 : f32 to vector<8x4xf32>
    %48 = arith.addf %46, %47 : vector<8x4xf32>
    %49 = arith.mulf %48, %44 : vector<8x4xf32>
    %cst_17 = arith.constant -0.0170881264 : f32
    %50 = vector.broadcast %cst_17 : f32 to vector<8x4xf32>
    %51 = arith.addf %49, %50 : vector<8x4xf32>
    %52 = arith.mulf %51, %44 : vector<8x4xf32>
    %cst_18 = arith.constant 0.0308918804 : f32
    %53 = vector.broadcast %cst_18 : f32 to vector<8x4xf32>
    %54 = arith.addf %52, %53 : vector<8x4xf32>
    %55 = arith.mulf %54, %44 : vector<8x4xf32>
    %cst_19 = arith.constant -0.0501743034 : f32
    %56 = vector.broadcast %cst_19 : f32 to vector<8x4xf32>
    %57 = arith.addf %55, %56 : vector<8x4xf32>
    %58 = arith.mulf %57, %44 : vector<8x4xf32>
    %cst_20 = arith.constant 0.0889789909 : f32
    %59 = vector.broadcast %cst_20 : f32 to vector<8x4xf32>
    %60 = arith.addf %58, %59 : vector<8x4xf32>
    %61 = arith.mulf %60, %44 : vector<8x4xf32>
    %cst_21 = arith.constant -0.214598805 : f32
    %62 = vector.broadcast %cst_21 : f32 to vector<8x4xf32>
    %63 = arith.addf %61, %62 : vector<8x4xf32>
    %64 = arith.mulf %63, %44 : vector<8x4xf32>
    %cst_22 = arith.constant 1.57079625 : f32
    %65 = vector.broadcast %cst_22 : f32 to vector<8x4xf32>
    %66 = arith.addf %64, %65 : vector<8x4xf32>
    %cst_23 = arith.constant 1.000000e+00 : f32
    %67 = vector.broadcast %cst_23 : f32 to vector<8x4xf32>
    %68 = arith.subf %67, %44 : vector<8x4xf32>
    %cst_24 = arith.constant 0.000000e+00 : f32
    %69 = vector.broadcast %cst_24 : f32 to vector<8x4xf32>
    %70 = arith.maximumf %68, %69 : vector<8x4xf32>
    %71 = math.sqrt %70 : vector<8x4xf32>
    %72 = arith.mulf %71, %66 : vector<8x4xf32>
    %cst_25 = arith.constant 1.57079637 : f32
    %73 = vector.broadcast %cst_25 : f32 to vector<8x4xf32>
    %74 = arith.subf %73, %72 : vector<8x4xf32>
    %cst_26 = arith.constant 2.000000e+00 : f32
    %75 = vector.broadcast %cst_26 : f32 to vector<8x4xf32>
    %76 = arith.mulf %75, %74 : vector<8x4xf32>
    %77 = arith.mulf %76, %74 : vector<8x4xf32>
    %c8_i32 = arith.constant 8 : i32
    %78 = arith.muli %arg0, %c8_i32 : i32
    %79 = tpu.iota {dimensions = array<i32: 0>} : vector<8x4xi32>
    %80 = vector.broadcast %78 : i32 to vector<8x4xi32>
    %81 = arith.addi %80, %79 : vector<8x4xi32>
    %c8_i32_27 = arith.constant 8 : i32
    %82 = vector.broadcast %c8_i32_27 : i32 to vector<8x4xi32>
    %83 = arith.cmpi slt, %81, %82 : vector<8x4xi32>
    %cst_28 = arith.constant 0.000000e+00 : f32
    %84 = vector.broadcast %cst_28 : f32 to vector<8x4xf32>
    %85 = arith.select %83, %77, %84 : vector<8x4xi1>, vector<8x4xf32>
    %c0_29 = arith.constant 0 : index
    %c0_30 = arith.constant 0 : index
    %86 = vector.load %arg3[%c0_29, %c0_30] : memref<1x1xf32, #tpu.memory_space<vmem>>, vector<1x1xf32>
    %87 = vector.shape_cast %85 : vector<8x4xf32> to vector<1x8x4xf32>
    %cst_31 = arith.constant dense<0.000000e+00> : vector<1xf32>
    %88 = vector.multi_reduction <add>, %87, %cst_31 [1, 2] : vector<1x8x4xf32> to vector<1xf32>
    %89 = vector.shape_cast %88 : vector<1xf32> to vector<1x1x1xf32>
    %90 = vector.extract %89[0, 0, 0] : f32 from vector<1x1x1xf32>
    %91 = vector.broadcast %90 : f32 to vector<1x1xf32>
    %92 = arith.addf %86, %91 : vector<1x1xf32>
    %c0_32 = arith.constant 0 : index
    %c0_33 = arith.constant 0 : index
    %93 = vector.load %arg3[%c0_32, %c0_33] : memref<1x1xf32, #tpu.memory_space<vmem>>, vector<1x1xf32>
    tpu.vector_store %arg3[%c0_32, %c0_33], %92 {strides = array<i32>} : memref<1x1xf32, #tpu.memory_space<vmem>>, vector<1x1xf32>,
    %c0_i32_34 = arith.constant 0 : i32
    %94 = arith.cmpi eq, %arg0, %c0_i32_34 : i32
    %95 = arith.extui %94 : i1 to i32
    %c0_i32_35 = arith.constant 0 : i32
    %96 = arith.cmpi ne, %95, %c0_i32_35 : i32
    scf.if %96 {
      %c0_36 = arith.constant 0 : index
      %c0_37 = arith.constant 0 : index
      %97 = vector.load %arg3[%c0_36, %c0_37] : memref<1x1xf32, #tpu.memory_space<vmem>>, vector<1x1xf32>
      %cst_38 = arith.constant 3.125000e-02 : f32
      %98 = vector.broadcast %cst_38 : f32 to vector<1x1xf32>
      %99 = arith.mulf %97, %98 : vector<1x1xf32>
      %c0_39 = arith.constant 0 : index
      %c0_40 = arith.constant 0 : index
      %100 = vector.load %arg3[%c0_39, %c0_40] : memref<1x1xf32, #tpu.memory_space<vmem>>, vector<1x1xf32>
      tpu.vector_store %arg3[%c0_39, %c0_40], %99 {strides = array<i32>} : memref<1x1xf32, #tpu.memory_space<vmem>>, vector<1x1xf32>,
    } else {
    }
    return
  }
  func.func @transform_0(%arg0: i32) -> (i32, i32) {
    %c0_i32 = arith.constant 0 : i32
    %c0_i32_0 = arith.constant 0 : i32
    return %arg0, %c0_i32 : i32, i32
  }
  func.func @transform_1(%arg0: i32) -> (i32, i32) {
    %c0_i32 = arith.constant 0 : i32
    %c0_i32_0 = arith.constant 0 : i32
    %c0_i32_1 = arith.constant 0 : i32
    return %c0_i32, %c0_i32_0 : i32, i32
  }
  func.func @transform_2(%arg0: i32) -> (i32, i32) {
    %c0_i32 = arith.constant 0 : i32
    %c0_i32_0 = arith.constant 0 : i32
    %c0_i32_1 = arith.constant 0 : i32
    return %c0_i32, %c0_i32_0 : i32, i32
  }
}

</mosaic_0001>

<bundles_post_ra>
// kernel: tpu_custom_call.1
= control target key start
LH: loop header
LB: loop body
LE: loop exit
PB: predicated region body
PF: predicated region fallthrough
CT: control target
= control target key end

     0   :  { %7 = vsyncpa [#allocation3], 0  ;;  %s457_s0 = inlined_call_operand.hbm [shape: f32[8,128], index: 0, kind: input, shape index: {}]   ;;  %s458_s1 = inlined_call_operand.hbm [shape: f32[4,128], index: 1, kind: input, shape index: {}]   ;;  %s459_s2 = inlined_call_operand.hbm [shape: f32[1,1], index: 2, kind: output, shape index: {}]  }
   0x1   :  { %8 = vsyncpa [#allocation6], 0 }
   0x2   :  { %9 = vsyncpa [#allocation4], 0  ;;  %s388_s9 = smov [#allocation2]   ;;  %s389_s11 = smov [#allocation5]  }
   0x3   :  { %s16_s10 = sshll.u32 %s388_s9, 4  ;;  %s26_s12 = sshll.u32 %s389_s11, 4  ;;  %s17_s10 = int_to_ptr.vmem [resolvable:$true] %s16_s10  ;;  %s27_s12 = int_to_ptr.vmem [resolvable:$true] %s26_s12 }
   0x4   :  { %s316_s15 = scalar_lea.hbm %s457_s0, 128 }
   0x5   :  { %p317_p0 = scmp.ne.s32.totalorder %s457_s0, %s316_s15  ;;  %p320_p1 = scmp.lt.u32.totalorder %s316_s15, %s457_s0 }
   0x7   :  { %p322_p2 = pnand %p320_p1, %p317_p0 }
   0x9   :  { %325 = shalt.err (!%p322_p2)
}
   0xa   :  { %s326_s20 = scalar_lea.vmem %s17_s10, 128  ;;  %p331_p4 = scmp.lt.s32.totalorder %s17_s10, %s17_s10 }
   0xb   :  { %p327_p3 = scmp.ne.s32.totalorder %s17_s10, %s326_s20  ;;  %p332_p5 = scmp.lt.s32.totalorder %s326_s20, %s326_s20 }
   0xd   :  { %p333_p6 = por %p332_p5, %p331_p4 }
   0xf   :  { %p334_p7 = pnand %p333_p6, %p327_p3 }
  0x11   :  { %337 = shalt.err (!%p334_p7)
}
  0x12   :  { %19 = dma.hbm_to_vmem [thread:$0]  %s457_s0, 128, %s17_s10, [#allocation3]  }
  0x13   :  { %s338_s25 = scalar_lea.hbm %s458_s1, 64 }
  0x14   :  { %p339_p8 = scmp.ne.s32.totalorder %s458_s1, %s338_s25  ;;  %p342_p9 = scmp.lt.u32.totalorder %s338_s25, %s458_s1 }
  0x16   :  { %p344_p10 = pnand %p342_p9, %p339_p8 }
  0x18   :  { %347 = shalt.err (!%p344_p10)
}
  0x19   :  { %s348_s30 = scalar_lea.vmem %s27_s12, 64  ;;  %p353_p12 = scmp.lt.s32.totalorder %s27_s12, %s27_s12 }
  0x1a   :  { %p349_p11 = scmp.ne.s32.totalorder %s27_s12, %s348_s30  ;;  %p354_p13 = scmp.lt.s32.totalorder %s348_s30, %s348_s30 }
  0x1c   :  { %p355_p0 = por %p354_p13, %p353_p12 }
  0x1e   :  { %p356_p1 = pnand %p355_p0, %p349_p11 }
  0x20   :  { %359 = shalt.err (!%p356_p1)
}
  0x21   :  { %29 = dma.hbm_to_vmem [thread:$0]  %s458_s1, 64, %s27_s12, [#allocation6]  }
  0x22   :  { %382 = dma.done.wait [#allocation3], 128  }
  0x23   :  { %383 = vsyncadd [#allocation3], 4294967168 }
  0x24   :  { %384 = dma.done.wait [#allocation6], 64  }
  0x25   :  { %385 = vsyncadd [#allocation6], 4294967232  ;;  %v44_v0 = vld [vmem:[#allocation5] sm:$0xf]  ;;  %vm46_vm0 = vcmask 1043456   ;;  %v390_v3 = vmov 0.0  }
  0x26   :  { %v45_v1 = vmul.f32 %v44_v0, %v44_v0  ;;  %284 = vmatprep.subr.bf16.mxu0 %v390_v3  ;;  %278 = vmatprep.subr.bf16.mxu1 %v390_v3  ;;  %vm391_vm1 = vmmov 0   ;;  %v43_v4 = vld [vmem:[#allocation2] sm:$0xff]  ;;  %vm235_vm6 = vcmask 31744   ;;  %vm41_vm7 = vcmask 0   ;;  %s392_s4 = smov [#allocation7]  }
  0x27   :  { %286 = vmatprep.mubr.msk.bf16.mxu0 %vm391_vm1, %v390_v3  ;;  %280 = vmatprep.mubr.msk.bf16.mxu1 %vm391_vm1, %v390_v3  ;;  %v182_v5 = vmul.f32 %v43_v4, %v43_v4  ;;  %v53_v13 = vpack.c.bf16 %v43_v4, %v43_v4  ;;  %42 = vst.msk [vmem:[#allocation7] sm:$0x1] %vm41_vm7, %v390_v3  ;;  %s262_s5 = sshll.u32 %s392_s4, 4  ;;  %s263_s5 = int_to_ptr.vmem [resolvable:$true] %s262_s5 }
  0x28   :  { %v47_v2 = vsel %vm46_vm0, %v45_v1, 0.0  ;;  %s360_s6 = scalar_lea.vmem %s263_s5, 16  ;;  %s364_s7 = scalar_lea.vmem %s263_s5, 32 }
  0x29   :  { %48 = vadd.xlane.f32.xlu0 %v47_v2  ;;  %v54_v15 = vunpack.c.l.bf16 %v53_v13  ;;  %p361_p2 = scmp.ne.s32.totalorder %s263_s5, %s360_s6  ;;  %p365_p3 = scmp.lt.s32.totalorder %s263_s5, %s263_s5 }
  0x2a   :  { %p366_p4 = scmp.lt.s32.totalorder %s364_s7, %s360_s6 }
  0x2b   :  { %v55_v16 = vsub.f32 %v43_v4, %v54_v15 }
  0x2c   :  { %p367_p5 = por %p366_p4, %p365_p3 }
  0x2d   :  { %183 = vadd.xlane.f32.xlu0 %v182_v5  ;;  %v56_v17 = vpack.c.bf16 %v55_v16, %v55_v16 }
  0x2e   :  { %p368_p6 = pnand %p367_p5, %p361_p2 }
  0xb6   :  { %v49_v6 = vpop.xlane.xlu0 %48 }
  0xb7   :  { %v50_v7 = vmax.f32 %v49_v6, 1e-24 }
  0xb9   :  { %308 = vrsqrt.f32 %v50_v7 }
  0xba   :  { %v184_v18 = vpop.xlane.xlu0 %183 }
  0xbb   :  { %v185_v19 = vmax.f32 %v184_v18, 1e-24 }
  0xbd   :  { %310 = vrsqrt.f32 %v185_v19 }
  0xc3   :  { %v309_v8 = vpop.eup %308 }
  0xc4   :  { %v52_v9 = vmul.f32 %v309_v8, %v44_v0 }
  0xc6   :  { %v57_v10 = vpack.c.bf16 %v52_v9, %v52_v9 }
  0xc7   :  { %v311_v24 = vpop.eup %310 }
  0xc8   :  { %285 = vmatpush3.bf16.xpose.msra.mxu0 %v57_v10  ;;  %v58_v11 = vunpack.c.l.bf16 %v57_v10 }
  0xc9   :  { %290 = vmatprep.subr.bf16.mxu0 %v390_v3 }
  0xca   :  { %v59_v12 = vsub.f32 %v52_v9, %v58_v11  ;;  %v234_v11 = vld [vmem:[#allocation7] sm:$0x1] }
  0xcc   :  { %v60_v14 = vpack.c.bf16 %v59_v12, %v59_v12 }
  0xce   :  { %279 = vmatpush3.bf16.xpose.msra.mxu1 %v60_v14 }
  0xcf   :  { %287 = vmatmul.mubr.bf16.vlgmr.msra.gmra.mrb[0].mxu0 %v53_v13 }
  0xd0   :  { %291 = vmatpush3.bf16.xpose.msra.mxu0 %v57_v10  ;;  %292 = vmatprep.mubr.msk.bf16.mxu0 %vm391_vm1, %v390_v3 }
  0xd5   :  { %281 = vmatmul.mubr.bf16.vlgmr.msra.gmra.mrb[0].mxu1 %v53_v13 }
  0xdb   :  { %293 = vmatmul.mubr.bf16.vlgmr.msra.gmra.mrb[0].mxu0 %v56_v17 }
 0x1a8   :  { %v95_v20 = vpop.f32.mrb[0].mxu1 }
 0x1a9   :  { %v282_v21 = vpop.f32.mrb[1].mxu1 }
 0x1aa   :  { %v98_v22 = vpop.f32.mrb[2].mxu1 }
 0x1ab   :  { %v283_v23 = vpop.f32.mrb[3].mxu1 }
 0x1ae   :  { %v175_v25 = vpop.f32.mrb[0].mxu0 }
 0x1af   :  { %v296_v26 = vadd.f32 %v175_v25, %v95_v20  ;;  %v294_v27 = vpop.f32.mrb[1].mxu0 }
 0x1b0   :  { %v178_v28 = vpop.f32.mrb[2].mxu0 }
 0x1b1   :  { %v187_v29 = vmul.f32 %v311_v24, %v296_v26  ;;  %v295_v30 = vpop.f32.mrb[3].mxu0 }
 0x1b3   :  { %v188_v31 = vmul.f32 2.0, %v187_v29 }
 0x1b5   :  { %v189_v32 = vsub.f32 2.0, %v188_v31 }
 0x1b7   :  { %v190_v33 = vmax.f32 %v189_v32, 0.0 }
 0x1b9   :  { %312 = vrsqrt.f32 %v190_v33  ;;  %vm193_vm2 = vcmp.eq.f32.partialorder %v190_v33, inf  ;;  %v196_v36 = vand.u32 2147483648, %v190_v33  ;;  %vm195_vm3 = vcmp.eq.f32.partialorder %v190_v33, 0.0 }
 0x1c3   :  { %v313_v34 = vpop.eup %312 }
 0x1c4   :  { %v192_v35 = vmul.f32 %v313_v34, %v190_v33 }
 0x1c6   :  { %v194_v37 = vsel %vm193_vm2, %v190_v33, %v192_v35 }
 0x1c7   :  { %v197_v38 = vsel %vm195_vm3, %v196_v36, %v194_v37 }
 0x1c8   :  { %v198_v39 = vmul.f32 0.5, %v197_v38 }
 0x1ca   :  { %v199_v40 = vmin.f32 %v198_v39, 1.0 }
 0x1cc   :  { %v200_v41 = vmul.f32 -0.0012624911, %v199_v40  ;;  %v214_v42 = vsub.f32 1.0, %v199_v40 }
 0x1ce   :  { %v201_v43 = vadd.f32 0.00667009, %v200_v41  ;;  %v215_v44 = vmax.f32 %v214_v42, 0.0 }
 0x1d0   :  { %v202_v45 = vmul.f32 %v201_v43, %v199_v40  ;;  %314 = vrsqrt.f32 %v215_v44  ;;  %vm218_vm4 = vcmp.eq.f32.partialorder %v215_v44, inf  ;;  %v221_v59 = vand.u32 2147483648, %v215_v44 }
 0x1d1   :  { %vm220_vm5 = vcmp.eq.f32.partialorder %v215_v44, 0.0 }
 0x1d2   :  { %v203_v46 = vadd.f32 -0.017088126, %v202_v45 }
 0x1d4   :  { %v204_v47 = vmul.f32 %v203_v46, %v199_v40 }
 0x1d6   :  { %v205_v48 = vadd.f32 0.03089188, %v204_v47 }
 0x1d8   :  { %v206_v49 = vmul.f32 %v205_v48, %v199_v40 }
 0x1da   :  { %v207_v50 = vadd.f32 -0.050174303, %v206_v49  ;;  %v315_v52 = vpop.eup %314 }
 0x1db   :  { %v217_v55 = vmul.f32 %v315_v52, %v215_v44 }
 0x1dc   :  { %v208_v51 = vmul.f32 %v207_v50, %v199_v40 }
 0x1dd   :  { %v219_v58 = vsel %vm218_vm4, %v215_v44, %v217_v55 }
 0x1de   :  { %v209_v53 = vadd.f32 0.08897899, %v208_v51  ;;  %v222_v61 = vsel %vm220_vm5, %v221_v59, %v219_v58 }
 0x1e0   :  { %v210_v54 = vmul.f32 %v209_v53, %v199_v40 }
 0x1e2   :  { %v211_v56 = vadd.f32 -0.2145988, %v210_v54 }
 0x1e4   :  { %v212_v57 = vmul.f32 %v211_v56, %v199_v40 }
 0x1e6   :  { %v213_v60 = vadd.f32 1.5707963, %v212_v57 }
 0x1e8   :  { %v223_v62 = vmul.f32 %v222_v61, %v213_v60 }
 0x1ea   :  { %v224_v63 = vsub.f32 1.5707964, %v223_v62 }
 0x1ec   :  { %v225_v0 = vmul.f32 2.0, %v224_v63 }
 0x1ee   :  { %v226_v1 = vmul.f32 %v225_v0, %v224_v63 }
 0x1f0   :  { %v236_v2 = vsel %vm235_vm6, %v226_v1, 0.0 }
 0x1f1   :  { %237 = vadd.xlane.f32.xlu1 %v236_v2 }
 0x27e   :  { %v238_v4 = vpop.xlane.xlu1 %237 }
 0x27f   :  { %v239_v5 = vrot.slane %v238_v4, 4 }
 0x281   :  { %v240_v6 = vadd.f32 %v239_v5, %v238_v4 }
 0x283   :  { %v241_v7 = vrot.slane %v240_v6, 2 }
 0x285   :  { %v242_v8 = vadd.f32 %v241_v7, %v240_v6 }
 0x287   :  { %v243_v9 = vrot.slane %v242_v8, 1 }
 0x289   :  { %v244_v10 = vadd.f32 %v243_v9, %v242_v8 }
 0x28b   :  { %301 = vpush %v244_v10 }
 0x2bc   :  { %s302_s1 = spop %301 }
 0x2bd   :  { %v246_v12 = vstv %s302_s1 }
 0x2be   :  { %v247_v13 = vadd.f32 %v246_v12, %v234_v11 }
 0x2c0   :  { %249 = vst.msk [vmem:[#allocation7] sm:$0x1] %vm41_vm7, %v247_v13 }
 0x2c7   :  { %v253_v14 = vld [vmem:[#allocation7] sm:$0x1] }
 0x2c8   :  { %v254_v15 = vmul.f32 0.03125, %v253_v14 }
 0x2ca   :  { %255 = vst.msk [vmem:[#allocation7] sm:$0x1] %vm41_vm7, %v254_v15 }
 0x2cb   :  { %371 = shalt.err (!%p368_p6)
}
 0x2cc   :  { %s372_s10 = scalar_lea.hbm %s459_s2, 16 }
 0x2cd   :  { %p373_p7 = scmp.ne.s32.totalorder %s459_s2, %s372_s10  ;;  %p376_p8 = scmp.lt.u32.totalorder %s372_s10, %s459_s2 }
 0x2cf   :  { %p378_p9 = pnand %p376_p8, %p373_p7 }
 0x2d1   :  { %381 = shalt.err (!%p378_p9)
}
 0x2d2   :  { %265 = dma.vmem_to_hbm [thread:$0]  %s263_s5, 16, %s459_s2, [#allocation4]  }
 0x2d3   :  { %386 = dma.done.wait [#allocation4], 16  }
 0x2d4   :  { %387 = vsyncadd [#allocation4], 4294967280 }
 0x2d5   :  { %269 = vsyncpa [#allocation3], 1 }
 0x2d6   :  { %270 = vsyncpa [#allocation6], 1 }
 0x2d7   :  { %271 = vsyncpa [#allocation4], 1 }

</bundles_post_ra>
